<compile_context>
chip_gen: v7x
topology: tpu7x:2x2x1
jax: 0.10.0
libtpu: 0.0.40
codegen_flags: <defaults>
</compile_context>

<pallas_src>
import functools

import jax
import jax.numpy as jnp
from jax.experimental import pallas as pl
from jax.experimental.pallas import tpu as pltpu

# ----------------------------- model dims ----------------------------------
IN_DIM = 784          # 1 * 28 * 28
HID_DIM = 100
OUT_DIM = 10
N_HIDDEN_REPEAT = 6   # the six identical (100,100) hidden layers
LAYER_DIMS = [(IN_DIM, HID_DIM)] + [(HID_DIM, HID_DIM)] * N_HIDDEN_REPEAT + \
             [(HID_DIM, OUT_DIM)]


def _pad_to(n, m):
    return ((n + m - 1) // m) * m


HID_PAD = 128          # 100 -> 128 (lane aligned)
OUT_PAD = 128          # 10  -> 128 (keep stores lane-dense)
MAX_BATCH_TILE = 512   # rows per grid step (per-TensorCore on v7x)


# ------------------------------- kernel ------------------------------------
def mlp_kernel(x_ref, w1_ref, b1_ref, wh_ref, bh_ref, wo_ref, bo_ref, o_ref,
               *, num_chains):
    """One batch tile: x(TB,784)f32 -> 8 fused matmul/bias/ReLU -> o(TB,128)f32.

    The tile is split into `num_chains` independent row sub-blocks whose layer
    chains are unrolled together, so the MXU can stream one sub-block's matmul
    while the other's VPU epilogue (bias+ReLU+bf16 cast) runs.
    """
    tb = x_ref.shape[0]
    sub = tb // num_chains

    # In-kernel f32 -> bf16 cast (no wrapper HBM round trip).
    hs = [x_ref[pl.ds(c * sub, sub), :].astype(jnp.bfloat16)
          for c in range(num_chains)]

    # layer 1: 784 -> 128 (K=784 unaligned; Mosaic masks the partial tile)
    b1 = b1_ref[...]
    hs = [jnp.maximum(
              jnp.dot(h, w1_ref[...], preferred_element_type=jnp.float32) + b1,
              0.0)
          for h in hs]

    # six identical 128 -> 128 hidden layers (stacked weights, VMEM-resident)
    for li in range(N_HIDDEN_REPEAT):
        w = wh_ref[li]
        b = bh_ref[li]
        hs = [jnp.maximum(
                  jnp.dot(h.astype(jnp.bfloat16), w,
                          preferred_element_type=jnp.float32) + b,
                  0.0)
              for h in hs]

    # output layer: 128 -> 128 (only first 10 lanes meaningful), no ReLU
    wo = wo_ref[...]
    bo = bo_ref[...]
    for c, h in enumerate(hs):
        o_ref[pl.ds(c * sub, sub), :] = (
            jnp.dot(h.astype(jnp.bfloat16), wo,
                    preferred_element_type=jnp.float32) + bo)


# ------------------------------ params --------------------------------------
def init_params(key):
    """PyTorch-default-style init: U(-1/sqrt(fan_in), 1/sqrt(fan_in))."""
    params = []
    for (fan_in, fan_out) in LAYER_DIMS:
        key, kw, kb = jax.random.split(key, 3)
        bound = 1.0 / jnp.sqrt(jnp.float32(fan_in))
        # stored as (in, out) so the kernel does x @ W (torch stores (out, in))
        w = jax.random.uniform(kw, (fan_in, fan_out), jnp.float32, -bound, bound)
        b = jax.random.uniform(kb, (fan_out,), jnp.float32, -bound, bound)
        params.append((w, b))
    return params


def _pad2(a, rows, cols):
    return jnp.pad(a, ((0, rows - a.shape[0]), (0, cols - a.shape[1])))


def prepare_params(params):
    """Pad to lane-aligned shapes and cast weights to bf16 -- done ONCE."""
    w1, b1 = params[0]
    w1_p = _pad2(w1, IN_DIM, HID_PAD).astype(jnp.bfloat16)        # (784, 128)
    b1_p = _pad2(b1[None, :], 1, HID_PAD).astype(jnp.float32)     # (1, 128)

    wh_p = jnp.stack(
        [_pad2(params[1 + i][0], HID_PAD, HID_PAD) for i in range(N_HIDDEN_REPEAT)]
    ).astype(jnp.bfloat16)                                        # (6, 128, 128)
    bh_p = jnp.stack(
        [_pad2(params[1 + i][1][None, :], 1, HID_PAD) for i in range(N_HIDDEN_REPEAT)]
    ).astype(jnp.float32)                                         # (6, 1, 128)

    wo, bo = params[-1]
    wo_p = _pad2(wo, HID_PAD, OUT_PAD).astype(jnp.bfloat16)       # (128, 128)
    bo_p = _pad2(bo[None, :], 1, OUT_PAD).astype(jnp.float32)     # (1, 128)
    return (w1_p, b1_p, wh_p, bh_p, wo_p, bo_p)


# ------------------------------ tiling ---------------------------------------
def _tiling(b):
    """Return (tile_rows, padded_batch).  >=2 tiles once B > 16 (megacore)."""
    b16 = _pad_to(max(b, 16), 16)          # bf16 sublane packing -> mult of 16
    if b16 <= 16:
        return 16, 16                      # single tiny tile
    n_tiles = max(2, -(-b16 // MAX_BATCH_TILE))
    tb = min(MAX_BATCH_TILE, _pad_to(-(-b16 // n_tiles), 32))
    return tb, tb * n_tiles


# ------------------------------ wrapper -------------------------------------
@jax.jit
def net_forward(x, prepared):
    """x: (B, 1, 28, 28) -> (B, 10) f32. `prepared` = prepare_params(params)."""
    w1_p, b1_p, wh_p, bh_p, wo_p, bo_p = prepared

    x = x.astype(jnp.float32)                  # x.float()
    b = x.shape[0]
    x_flat = x.reshape(b, -1)                  # nn.Flatten -> (B, 784), metadata-only

    tb, b_pad = _tiling(b)
    grid = (b_pad // tb,)
    num_chains = 2 if tb >= 32 else 1

    if b_pad != b:                             # only batch rows get padded
        x_flat = jnp.pad(x_flat, ((0, b_pad - b), (0, 0)))

    operands = (x_flat, w1_p, b1_p, wh_p, bh_p, wo_p, bo_p)

    def const_spec(shape):
        nd = len(shape)
        return pl.BlockSpec(shape, lambda i, _nd=nd: (0,) * _nd)

    in_specs = [
        pl.BlockSpec((tb, IN_DIM), lambda i: (i, 0)),   # x: advances with grid
        const_spec(w1_p.shape),                         # weights stay resident
        const_spec(b1_p.shape),
        const_spec(wh_p.shape),
        const_spec(bh_p.shape),
        const_spec(wo_p.shape),
        const_spec(bo_p.shape),
    ]
    out_spec = pl.BlockSpec((tb, OUT_PAD), lambda i: (i, 0))

    flops = 2 * b_pad * (IN_DIM * HID_PAD
                         + N_HIDDEN_REPEAT * HID_PAD * HID_PAD
                         + HID_PAD * OUT_PAD)
    bytes_accessed = (sum(op.size * op.dtype.itemsize for op in operands)
                      + b_pad * OUT_PAD * 4)

    out = pl.pallas_call(
        functools.partial(mlp_kernel, num_chains=num_chains),
        out_shape=jax.ShapeDtypeStruct((b_pad, OUT_PAD), jnp.float32),
        grid=grid,
        in_specs=in_specs,
        out_specs=out_spec,
        compiler_params=pltpu.CompilerParams(
            dimension_semantics=("parallel",),      # v7x megacore batch split
            vmem_limit_bytes=32 << 20,              # safe on every generation
        ),
        cost_estimate=pl.CostEstimate(
            flops=flops, transcendentals=0, bytes_accessed=bytes_accessed),
    )(*operands)

    return out[:b, :OUT_DIM]


# ---------------------------- references (JAX) -------------------------------
def net_forward_ref(x, params):
    """Pure f32 reference (exact torch semantics)."""
    h = x.astype(jnp.float32).reshape(x.shape[0], -1)
    for i, (w, bias) in enumerate(params):
        h = h @ w + bias
        if i != len(params) - 1:
            h = jnp.maximum(h, 0.0)
    return h


def net_forward_bf16_ref(x, params):
    """Reference emulating the kernel's bf16-inputs / f32-accumulate matmuls."""
    h = x.astype(jnp.float32).reshape(x.shape[0], -1)
    for i, (w, bias) in enumerate(params):
        h = jnp.dot(h.astype(jnp.bfloat16), w.astype(jnp.bfloat16),
                    preferred_element_type=jnp.float32) + bias
        if i != len(params) - 1:
            h = jnp.maximum(h, 0.0)
    return h


if __name__ == "__main__":
    key = jax.random.PRNGKey(0)
    kx, kx2, kx3, kp = jax.random.split(key, 4)

    params = init_params(kp)
    prepared = prepare_params(params)

    # MNIST-like small batch: (B, 1, 28, 28), single 16-row tile
    x = jax.random.normal(kx, (8, 1, 28, 28), jnp.float32)
    out = jax.block_until_ready(net_forward(x, prepared))
    assert out.shape == (8, 10), out.shape
    ref16 = net_forward_bf16_ref(x, params)
    ref32 = net_forward_ref(x, params)
    assert jnp.allclose(out, ref16, atol=2e-3, rtol=2e-3), (
        float(jnp.max(jnp.abs(out - ref16))))
    assert jnp.allclose(out, ref32, atol=5e-2, rtol=5e-2), (
        float(jnp.max(jnp.abs(out - ref32))))

    # non-multiple batch: exercises row padding + 2-tile grid (tb=64, b_pad=128)
    x3 = jax.random.normal(kx3, (100, 1, 28, 28), jnp.float32)
    out3 = jax.block_until_ready(net_forward(x3, prepared))
    assert out3.shape == (100, 10), out3.shape
    ref16_3 = net_forward_bf16_ref(x3, params)
    assert jnp.allclose(out3, ref16_3, atol=2e-3, rtol=2e-3), (
        float(jnp.max(jnp.abs(out3 - ref16_3))))

    # larger batch: 2 tiles of 256 rows, megacore-parallel on v7x
    x2 = jax.random.normal(kx2, (512, 1, 28, 28), jnp.float32)
    out2 = jax.block_until_ready(net_forward(x2, prepared))
    assert out2.shape == (512, 10), out2.shape
    ref16_2 = net_forward_bf16_ref(x2, params)
    assert jnp.allclose(out2, ref16_2, atol=2e-3, rtol=2e-3), (
        float(jnp.max(jnp.abs(out2 - ref16_2))))

    print("KERNEL_OK")
</pallas_src>

<mosaic_0001>
module attributes {stable_mosaic.version = 11 : i64} {
  func.func @mlp_kernel(%arg0: i32, %arg1: memref<16x784xf32, #tpu.memory_space<vmem>>, %arg2: memref<784x128xbf16, #tpu.memory_space<vmem>>, %arg3: memref<1x128xf32, #tpu.memory_space<vmem>>, %arg4: memref<6x128x128xbf16, #tpu.memory_space<vmem>>, %arg5: memref<6x1x128xf32, #tpu.memory_space<vmem>>, %arg6: memref<128x128xbf16, #tpu.memory_space<vmem>>, %arg7: memref<1x128xf32, #tpu.memory_space<vmem>>, %arg8: memref<16x128xf32, #tpu.memory_space<vmem>>) attributes {dimension_semantics = [#tpu.dimension_semantics<parallel>], iteration_bounds = array<i64: 1>, scalar_prefetch = 0 : i64, scratch_operands = 0 : i64, tpu.core_type = #tpu.core_type<tc>, window_params = [{transform_indices = @transform_0, window_bounds = array<i64: 16, 784>}, {pipeline_mode = #tpu.pipeline_mode<synchronous>, transform_indices = @transform_1, window_bounds = array<i64: 784, 128>}, {pipeline_mode = #tpu.pipeline_mode<synchronous>, transform_indices = @transform_2, window_bounds = array<i64: 1, 128>}, {pipeline_mode = #tpu.pipeline_mode<synchronous>, transform_indices = @transform_3, window_bounds = array<i64: 6, 128, 128>}, {pipeline_mode = #tpu.pipeline_mode<synchronous>, transform_indices = @transform_4, window_bounds = array<i64: 6, 1, 128>}, {pipeline_mode = #tpu.pipeline_mode<synchronous>, transform_indices = @transform_5, window_bounds = array<i64: 128, 128>}, {pipeline_mode = #tpu.pipeline_mode<synchronous>, transform_indices = @transform_6, window_bounds = array<i64: 1, 128>}, {transform_indices = @transform_7, window_bounds = array<i64: 16, 128>}]} {
    %c0 = arith.constant 0 : index
    %c0_0 = arith.constant 0 : index
    %0 = vector.load %arg1[%c0, %c0_0] : memref<16x784xf32, #tpu.memory_space<vmem>>, vector<16x784xf32>
    %1 = arith.truncf %0 : vector<16x784xf32> to vector<16x784xbf16>
    %c0_1 = arith.constant 0 : index
    %c0_2 = arith.constant 0 : index
    %2 = vector.load %arg3[%c0_1, %c0_2] : memref<1x128xf32, #tpu.memory_space<vmem>>, vector<1x128xf32>
    %c0_3 = arith.constant 0 : index
    %c0_4 = arith.constant 0 : index
    %3 = vector.load %arg2[%c0_3, %c0_4] : memref<784x128xbf16, #tpu.memory_space<vmem>>, vector<784x128xbf16>
    %cst = arith.constant dense<0.000000e+00> : vector<16x128xf32>
    %4 = tpu.matmul %1, %3, %cst {dimension_numbers = #tpu.dot_dimension_numbers<[1], [0], [0], [1], [0, 0, 1, 1], [], []>} : vector<16x784xbf16>, vector<784x128xbf16>, vector<16x128xf32> -> vector<16x128xf32>
    %5 = vector.broadcast %2 : vector<1x128xf32> to vector<16x128xf32>
    %6 = arith.addf %4, %5 : vector<16x128xf32>
    %cst_5 = arith.constant 0.000000e+00 : f32
    %7 = vector.broadcast %cst_5 : f32 to vector<16x128xf32>
    %8 = arith.maximumf %6, %7 : vector<16x128xf32>
    %c0_6 = arith.constant 0 : index
    %c0_7 = arith.constant 0 : index
    %c0_8 = arith.constant 0 : index
    %9 = vector.load %arg4[%c0_6, %c0_7, %c0_8] : memref<6x128x128xbf16, #tpu.memory_space<vmem>>, vector<1x128x128xbf16>
    %10 = vector.shape_cast %9 : vector<1x128x128xbf16> to vector<128x128xbf16>
    %c0_9 = arith.constant 0 : index
    %c0_10 = arith.constant 0 : index
    %c0_11 = arith.constant 0 : index
    %11 = vector.load %arg5[%c0_9, %c0_10, %c0_11] : memref<6x1x128xf32, #tpu.memory_space<vmem>>, vector<1x1x128xf32>
    %12 = vector.shape_cast %11 : vector<1x1x128xf32> to vector<1x128xf32>
    %13 = arith.truncf %8 : vector<16x128xf32> to vector<16x128xbf16>
    %cst_12 = arith.constant dense<0.000000e+00> : vector<16x128xf32>
    %14 = tpu.matmul %13, %10, %cst_12 {dimension_numbers = #tpu.dot_dimension_numbers<[1], [0], [0], [1], [0, 0, 1, 1], [], []>} : vector<16x128xbf16>, vector<128x128xbf16>, vector<16x128xf32> -> vector<16x128xf32>
    %15 = vector.broadcast %12 : vector<1x128xf32> to vector<16x128xf32>
    %16 = arith.addf %14, %15 : vector<16x128xf32>
    %cst_13 = arith.constant 0.000000e+00 : f32
    %17 = vector.broadcast %cst_13 : f32 to vector<16x128xf32>
    %18 = arith.maximumf %16, %17 : vector<16x128xf32>
    %c1 = arith.constant 1 : index
    %c0_14 = arith.constant 0 : index
    %c0_15 = arith.constant 0 : index
    %19 = vector.load %arg4[%c1, %c0_14, %c0_15] : memref<6x128x128xbf16, #tpu.memory_space<vmem>>, vector<1x128x128xbf16>
    %20 = vector.shape_cast %19 : vector<1x128x128xbf16> to vector<128x128xbf16>
    %c1_16 = arith.constant 1 : index
    %c0_17 = arith.constant 0 : index
    %c0_18 = arith.constant 0 : index
    %21 = vector.load %arg5[%c1_16, %c0_17, %c0_18] : memref<6x1x128xf32, #tpu.memory_space<vmem>>, vector<1x1x128xf32>
    %22 = vector.shape_cast %21 : vector<1x1x128xf32> to vector<1x128xf32>
    %23 = arith.truncf %18 : vector<16x128xf32> to vector<16x128xbf16>
    %cst_19 = arith.constant dense<0.000000e+00> : vector<16x128xf32>
    %24 = tpu.matmul %23, %20, %cst_19 {dimension_numbers = #tpu.dot_dimension_numbers<[1], [0], [0], [1], [0, 0, 1, 1], [], []>} : vector<16x128xbf16>, vector<128x128xbf16>, vector<16x128xf32> -> vector<16x128xf32>
    %25 = vector.broadcast %22 : vector<1x128xf32> to vector<16x128xf32>
    %26 = arith.addf %24, %25 : vector<16x128xf32>
    %cst_20 = arith.constant 0.000000e+00 : f32
    %27 = vector.broadcast %cst_20 : f32 to vector<16x128xf32>
    %28 = arith.maximumf %26, %27 : vector<16x128xf32>
    %c2 = arith.constant 2 : index
    %c0_21 = arith.constant 0 : index
    %c0_22 = arith.constant 0 : index
    %29 = vector.load %arg4[%c2, %c0_21, %c0_22] : memref<6x128x128xbf16, #tpu.memory_space<vmem>>, vector<1x128x128xbf16>
    %30 = vector.shape_cast %29 : vector<1x128x128xbf16> to vector<128x128xbf16>
    %c2_23 = arith.constant 2 : index
    %c0_24 = arith.constant 0 : index
    %c0_25 = arith.constant 0 : index
    %31 = vector.load %arg5[%c2_23, %c0_24, %c0_25] : memref<6x1x128xf32, #tpu.memory_space<vmem>>, vector<1x1x128xf32>
    %32 = vector.shape_cast %31 : vector<1x1x128xf32> to vector<1x128xf32>
    %33 = arith.truncf %28 : vector<16x128xf32> to vector<16x128xbf16>
    %cst_26 = arith.constant dense<0.000000e+00> : vector<16x128xf32>
    %34 = tpu.matmul %33, %30, %cst_26 {dimension_numbers = #tpu.dot_dimension_numbers<[1], [0], [0], [1], [0, 0, 1, 1], [], []>} : vector<16x128xbf16>, vector<128x128xbf16>, vector<16x128xf32> -> vector<16x128xf32>
    %35 = vector.broadcast %32 : vector<1x128xf32> to vector<16x128xf32>
    %36 = arith.addf %34, %35 : vector<16x128xf32>
    %cst_27 = arith.constant 0.000000e+00 : f32
    %37 = vector.broadcast %cst_27 : f32 to vector<16x128xf32>
    %38 = arith.maximumf %36, %37 : vector<16x128xf32>
    %c3 = arith.constant 3 : index
    %c0_28 = arith.constant 0 : index
    %c0_29 = arith.constant 0 : index
    %39 = vector.load %arg4[%c3, %c0_28, %c0_29] : memref<6x128x128xbf16, #tpu.memory_space<vmem>>, vector<1x128x128xbf16>
    %40 = vector.shape_cast %39 : vector<1x128x128xbf16> to vector<128x128xbf16>
    %c3_30 = arith.constant 3 : index
    %c0_31 = arith.constant 0 : index
    %c0_32 = arith.constant 0 : index
    %41 = vector.load %arg5[%c3_30, %c0_31, %c0_32] : memref<6x1x128xf32, #tpu.memory_space<vmem>>, vector<1x1x128xf32>
    %42 = vector.shape_cast %41 : vector<1x1x128xf32> to vector<1x128xf32>
    %43 = arith.truncf %38 : vector<16x128xf32> to vector<16x128xbf16>
    %cst_33 = arith.constant dense<0.000000e+00> : vector<16x128xf32>
    %44 = tpu.matmul %43, %40, %cst_33 {dimension_numbers = #tpu.dot_dimension_numbers<[1], [0], [0], [1], [0, 0, 1, 1], [], []>} : vector<16x128xbf16>, vector<128x128xbf16>, vector<16x128xf32> -> vector<16x128xf32>
    %45 = vector.broadcast %42 : vector<1x128xf32> to vector<16x128xf32>
    %46 = arith.addf %44, %45 : vector<16x128xf32>
    %cst_34 = arith.constant 0.000000e+00 : f32
    %47 = vector.broadcast %cst_34 : f32 to vector<16x128xf32>
    %48 = arith.maximumf %46, %47 : vector<16x128xf32>
    %c4 = arith.constant 4 : index
    %c0_35 = arith.constant 0 : index
    %c0_36 = arith.constant 0 : index
    %49 = vector.load %arg4[%c4, %c0_35, %c0_36] : memref<6x128x128xbf16, #tpu.memory_space<vmem>>, vector<1x128x128xbf16>
    %50 = vector.shape_cast %49 : vector<1x128x128xbf16> to vector<128x128xbf16>
    %c4_37 = arith.constant 4 : index
    %c0_38 = arith.constant 0 : index
    %c0_39 = arith.constant 0 : index
    %51 = vector.load %arg5[%c4_37, %c0_38, %c0_39] : memref<6x1x128xf32, #tpu.memory_space<vmem>>, vector<1x1x128xf32>
    %52 = vector.shape_cast %51 : vector<1x1x128xf32> to vector<1x128xf32>
    %53 = arith.truncf %48 : vector<16x128xf32> to vector<16x128xbf16>
    %cst_40 = arith.constant dense<0.000000e+00> : vector<16x128xf32>
    %54 = tpu.matmul %53, %50, %cst_40 {dimension_numbers = #tpu.dot_dimension_numbers<[1], [0], [0], [1], [0, 0, 1, 1], [], []>} : vector<16x128xbf16>, vector<128x128xbf16>, vector<16x128xf32> -> vector<16x128xf32>
    %55 = vector.broadcast %52 : vector<1x128xf32> to vector<16x128xf32>
    %56 = arith.addf %54, %55 : vector<16x128xf32>
    %cst_41 = arith.constant 0.000000e+00 : f32
    %57 = vector.broadcast %cst_41 : f32 to vector<16x128xf32>
    %58 = arith.maximumf %56, %57 : vector<16x128xf32>
    %c5 = arith.constant 5 : index
    %c0_42 = arith.constant 0 : index
    %c0_43 = arith.constant 0 : index
    %59 = vector.load %arg4[%c5, %c0_42, %c0_43] : memref<6x128x128xbf16, #tpu.memory_space<vmem>>, vector<1x128x128xbf16>
    %60 = vector.shape_cast %59 : vector<1x128x128xbf16> to vector<128x128xbf16>
    %c5_44 = arith.constant 5 : index
    %c0_45 = arith.constant 0 : index
    %c0_46 = arith.constant 0 : index
    %61 = vector.load %arg5[%c5_44, %c0_45, %c0_46] : memref<6x1x128xf32, #tpu.memory_space<vmem>>, vector<1x1x128xf32>
    %62 = vector.shape_cast %61 : vector<1x1x128xf32> to vector<1x128xf32>
    %63 = arith.truncf %58 : vector<16x128xf32> to vector<16x128xbf16>
    %cst_47 = arith.constant dense<0.000000e+00> : vector<16x128xf32>
    %64 = tpu.matmul %63, %60, %cst_47 {dimension_numbers = #tpu.dot_dimension_numbers<[1], [0], [0], [1], [0, 0, 1, 1], [], []>} : vector<16x128xbf16>, vector<128x128xbf16>, vector<16x128xf32> -> vector<16x128xf32>
    %65 = vector.broadcast %62 : vector<1x128xf32> to vector<16x128xf32>
    %66 = arith.addf %64, %65 : vector<16x128xf32>
    %cst_48 = arith.constant 0.000000e+00 : f32
    %67 = vector.broadcast %cst_48 : f32 to vector<16x128xf32>
    %68 = arith.maximumf %66, %67 : vector<16x128xf32>
    %c0_49 = arith.constant 0 : index
    %c0_50 = arith.constant 0 : index
    %69 = vector.load %arg6[%c0_49, %c0_50] : memref<128x128xbf16, #tpu.memory_space<vmem>>, vector<128x128xbf16>
    %c0_51 = arith.constant 0 : index
    %c0_52 = arith.constant 0 : index
    %70 = vector.load %arg7[%c0_51, %c0_52] : memref<1x128xf32, #tpu.memory_space<vmem>>, vector<1x128xf32>
    %71 = arith.truncf %68 : vector<16x128xf32> to vector<16x128xbf16>
    %cst_53 = arith.constant dense<0.000000e+00> : vector<16x128xf32>
    %72 = tpu.matmul %71, %69, %cst_53 {dimension_numbers = #tpu.dot_dimension_numbers<[1], [0], [0], [1], [0, 0, 1, 1], [], []>} : vector<16x128xbf16>, vector<128x128xbf16>, vector<16x128xf32> -> vector<16x128xf32>
    %73 = vector.broadcast %70 : vector<1x128xf32> to vector<16x128xf32>
    %74 = arith.addf %72, %73 : vector<16x128xf32>
    %c0_54 = arith.constant 0 : index
    %c0_55 = arith.constant 0 : index
    %75 = vector.load %arg8[%c0_54, %c0_55] : memref<16x128xf32, #tpu.memory_space<vmem>>, vector<16x128xf32>
    tpu.vector_store %arg8[%c0_54, %c0_55], %74 {strides = array<i32>} : memref<16x128xf32, #tpu.memory_space<vmem>>, vector<16x128xf32>,
    return
  }
  func.func @transform_0(%arg0: i32) -> (i32, i32) {
    %c0_i32 = arith.constant 0 : i32
    %c0_i32_0 = arith.constant 0 : i32
    return %arg0, %c0_i32 : i32, i32
  }
  func.func @transform_1(%arg0: i32) -> (i32, i32) {
    %c0_i32 = arith.constant 0 : i32
    %c0_i32_0 = arith.constant 0 : i32
    %c0_i32_1 = arith.constant 0 : i32
    return %c0_i32, %c0_i32_0 : i32, i32
  }
  func.func @transform_2(%arg0: i32) -> (i32, i32) {
    %c0_i32 = arith.constant 0 : i32
    %c0_i32_0 = arith.constant 0 : i32
    %c0_i32_1 = arith.constant 0 : i32
    return %c0_i32, %c0_i32_0 : i32, i32
  }
  func.func @transform_3(%arg0: i32) -> (i32, i32, i32) {
    %c0_i32 = arith.constant 0 : i32
    %c0_i32_0 = arith.constant 0 : i32
    %c0_i32_1 = arith.constant 0 : i32
    %c0_i32_2 = arith.constant 0 : i32
    return %c0_i32, %c0_i32_0, %c0_i32_1 : i32, i32, i32
  }
  func.func @transform_4(%arg0: i32) -> (i32, i32, i32) {
    %c0_i32 = arith.constant 0 : i32
    %c0_i32_0 = arith.constant 0 : i32
    %c0_i32_1 = arith.constant 0 : i32
    %c0_i32_2 = arith.constant 0 : i32
    return %c0_i32, %c0_i32_0, %c0_i32_1 : i32, i32, i32
  }
  func.func @transform_5(%arg0: i32) -> (i32, i32) {
    %c0_i32 = arith.constant 0 : i32
    %c0_i32_0 = arith.constant 0 : i32
    %c0_i32_1 = arith.constant 0 : i32
    return %c0_i32, %c0_i32_0 : i32, i32
  }
  func.func @transform_6(%arg0: i32) -> (i32, i32) {
    %c0_i32 = arith.constant 0 : i32
    %c0_i32_0 = arith.constant 0 : i32
    %c0_i32_1 = arith.constant 0 : i32
    return %c0_i32, %c0_i32_0 : i32, i32
  }
  func.func @transform_7(%arg0: i32) -> (i32, i32) {
    %c0_i32 = arith.constant 0 : i32
    %c0_i32_0 = arith.constant 0 : i32
    return %arg0, %c0_i32 : i32, i32
  }
}

</mosaic_0001>

<bundles_post_ra>
// kernel: net_forward.1
= control target key start
LH: loop header
LB: loop body
LE: loop exit
PB: predicated region body
PF: predicated region fallthrough
CT: control target
= control target key end

     0   :  { %v2019_v43 = vmov 0.0   ;;  %vm2020_vm0 = vmmov 0   ;;  %vm447_vm1 = vcmask 130048   ;;  %s2521_s1 = inlined_call_operand.vmem [shape: bf16[784,128], index: 1, kind: input, shape index: {}]   ;;  %s2522_s0 = inlined_call_operand.vmem [shape: f32[16,784], index: 0, kind: input, shape index: {}]   ;;  %s2523_s3 = inlined_call_operand.vmem [shape: bf16[6,128,128], index: 3, kind: input, shape index: {}]   ;;  %s2524_s2 = inlined_call_operand.vmem [shape: f32[1,128], index: 2, kind: input, shape index: {}]   ;;  %s2525_s4 = inlined_call_operand.vmem [shape: f32[6,1,128], index: 4, kind: input, shape index: {}]   ;;  %s2526_s5 = inlined_call_operand.vmem [shape: bf16[128,128], index: 5, kind: input, shape index: {}]   ;;  %s2527_s6 = inlined_call_operand.vmem [shape: f32[1,128], index: 6, kind: input, shape index: {}]   ;;  %s2528_s7 = inlined_call_operand.vmem [shape: f32[16,128], index: 7, kind: output, shape index: {}]  }
   0x1   :  { %v1914_v0 = vld [vmem:[%s2521_s1 + $0x40] sm:$0xff]   ;;  %v1918_v4 = vld [vmem:[%s2521_s1 + $0x48] sm:$0xff]   ;;  %v1922_v8 = vld [vmem:[%s2521_s1 + $0x50] sm:$0xff]  }
   0x2   :  { %v1915_v1 = vld [vmem:[%s2521_s1] sm:$0xff]   ;;  %1635 = vmatprep.subr.bf16.mxu0 %v1914_v0  ;;  %v1919_v5 = vld [vmem:[%s2521_s1 + $0x8] sm:$0xff]   ;;  %v1923_v9 = vld [vmem:[%s2521_s1 + $0x10] sm:$0xff]  }
   0x3   :  { %v1916_v2 = vld [vmem:[%s2521_s1 + $0xc0] sm:$0xff]   ;;  %1636 = vmatpush3.bf16.msra.mxu0 %v1915_v1  ;;  %v1920_v6 = vld [vmem:[%s2521_s1 + $0xc8] sm:$0xff]   ;;  %v1924_v10 = vld [vmem:[%s2521_s1 + $0xd0] sm:$0xff]  }
   0x4   :  { %v1917_v3 = vld [vmem:[%s2521_s1 + $0x80] sm:$0xff]   ;;  %1657 = vmatprep.subr.bf16.mxu1 %v1916_v2  ;;  %1637 = vmatprep.subr.bf16.mxu0 %v1918_v4  ;;  %v1921_v7 = vld [vmem:[%s2521_s1 + $0x88] sm:$0xff]   ;;  %v1925_v11 = vld [vmem:[%s2521_s1 + $0x90] sm:$0xff]  }
   0x5   :  { %1658 = vmatpush3.bf16.msra.mxu1 %v1917_v3  ;;  %v1926_v12 = vld [vmem:[%s2521_s1 + $0x58] sm:$0xff]   ;;  %v1930_v16 = vld [vmem:[%s2521_s1 + $0x60] sm:$0xff]   ;;  %v1934_v20 = vld [vmem:[%s2521_s1 + $0x68] sm:$0xff]  }
   0x6   :  { %1659 = vmatprep.subr.bf16.mxu1 %v1920_v6  ;;  %v1927_v13 = vld [vmem:[%s2521_s1 + $0x18] sm:$0xff]   ;;  %v1931_v17 = vld [vmem:[%s2521_s1 + $0x20] sm:$0xff]   ;;  %v1935_v21 = vld [vmem:[%s2521_s1 + $0x28] sm:$0xff]  }
   0x7   :  { %1638 = vmatpush3.bf16.msra.mxu0 %v1919_v5  ;;  %v1928_v14 = vld [vmem:[%s2521_s1 + $0xd8] sm:$0xff]   ;;  %v1932_v18 = vld [vmem:[%s2521_s1 + $0xe0] sm:$0xff]   ;;  %v1936_v22 = vld [vmem:[%s2521_s1 + $0xe8] sm:$0xff]  }
   0x8   :  { %1639 = vmatprep.subr.bf16.mxu0 %v1922_v8  ;;  %v1929_v15 = vld [vmem:[%s2521_s1 + $0x98] sm:$0xff]   ;;  %v1933_v19 = vld [vmem:[%s2521_s1 + $0xa0] sm:$0xff]   ;;  %v1937_v23 = vld [vmem:[%s2521_s1 + $0xa8] sm:$0xff]  }
   0x9   :  { %1660 = vmatpush3.bf16.msra.mxu1 %v1921_v7  ;;  %v1938_v24 = vld [vmem:[%s2521_s1 + $0x70] sm:$0xff]   ;;  %v1942_v28 = vld [vmem:[%s2521_s1 + $0x78] sm:$0xff]   ;;  %v28_v31 = vld [vmem:[%s2522_s0 + $0x8] sm:$0xff] }
   0xa   :  { %1661 = vmatprep.subr.bf16.mxu1 %v1924_v10  ;;  %v1939_v25 = vld [vmem:[%s2521_s1 + $0x30] sm:$0xff]   ;;  %v1943_v29 = vld [vmem:[%s2521_s1 + $0x38] sm:$0xff]   ;;  %v35_v32 = vld [vmem:[%s2522_s0 + $0x40] sm:$0xff] }
   0xb   :  { %1640 = vmatpush3.bf16.msra.mxu0 %v1923_v9  ;;  %v1940_v26 = vld [vmem:[%s2521_s1 + $0xf0] sm:$0xff]   ;;  %v1944_v30 = vld [vmem:[%s2521_s1 + $0xf8] sm:$0xff]   ;;  %v42_v33 = vpack.c.bf16 %v35_v32, %v28_v31  ;;  %v27_v35 = vld [vmem:[%s2522_s0] sm:$0xff] }
   0xc   :  { %1641 = vmatprep.subr.bf16.mxu0 %v1926_v12  ;;  %v1941_v27 = vld [vmem:[%s2521_s1 + $0xb0] sm:$0xff]   ;;  %v1945_v34 = vld [vmem:[%s2521_s1 + $0xb8] sm:$0xff]   ;;  %v1946_v38 = vld [vmem:[%s2521_s1 + $0x140] sm:$0xff]  }
   0xd   :  { %1662 = vmatpush3.bf16.msra.mxu1 %v1925_v11  ;;  %v34_v36 = vld [vmem:[%s2522_s0 + $0x38] sm:$0xff]  ;;  %483 = vmatprep.mubr.bf16.mxu0 %v42_v33  ;;  %v37_v40 = vld [vmem:[%s2522_s0 + $0x50] sm:$0xff]  ;;  %v1947_v42 = vld [vmem:[%s2521_s1 + $0x100] sm:$0xff]  }
   0xe   :  { %1663 = vmatprep.subr.bf16.mxu1 %v1928_v14  ;;  %v41_v37 = vpack.c.bf16 %v34_v36, %v27_v35  ;;  %v30_v39 = vld [vmem:[%s2522_s0 + $0x18] sm:$0xff]  ;;  %v29_v44 = vld [vmem:[%s2522_s0 + $0x10] sm:$0xff]  ;;  %v36_v45 = vld [vmem:[%s2522_s0 + $0x48] sm:$0xff] }
   0xf   :  { %1642 = vmatpush3.bf16.msra.mxu0 %v1927_v13  ;;  %v44_v41 = vpack.c.bf16 %v37_v40, %v30_v39  ;;  %v43_v46 = vpack.c.bf16 %v36_v45, %v29_v44  ;;  %v1948_v47 = vld [vmem:[%s2521_s1 + $0x148] sm:$0xff]   ;;  %v1950_v49 = vld [vmem:[%s2521_s1 + $0x150] sm:$0xff]   ;;  %v1952_v51 = vld [vmem:[%s2521_s1 + $0x158] sm:$0xff]  }
  0x10   :  { %1643 = vmatprep.subr.bf16.mxu0 %v1930_v16  ;;  %v1949_v48 = vld [vmem:[%s2521_s1 + $0x108] sm:$0xff]   ;;  %v1951_v50 = vld [vmem:[%s2521_s1 + $0x110] sm:$0xff]   ;;  %v1953_v52 = vld [vmem:[%s2521_s1 + $0x118] sm:$0xff]  }
  0x11   :  { %1664 = vmatpush3.bf16.msra.mxu1 %v1929_v15  ;;  %524 = vmatprep.mubr.bf16.mxu1 %v44_v41  ;;  %v1954_v53 = vld [vmem:[%s2521_s1 + $0x160] sm:$0xff]   ;;  %v1956_v55 = vld [vmem:[%s2521_s1 + $0x168] sm:$0xff]   ;;  %v33_v61 = vld [vmem:[%s2522_s0 + $0x30] sm:$0xff] }
  0x12   :  { %1665 = vmatprep.subr.bf16.mxu1 %v1932_v18  ;;  %v1955_v54 = vld [vmem:[%s2521_s1 + $0x120] sm:$0xff]   ;;  %v32_v57 = vld [vmem:[%s2522_s0 + $0x28] sm:$0xff]  ;;  %v1958_v63 = vld [vmem:[%s2521_s1 + $0x170] sm:$0xff]  }
  0x13   :  { %1644 = vmatpush3.bf16.msra.mxu0 %v1931_v17  ;;  %v1962_v56 = vld [vmem:[%s2521_s1 + $0x180] sm:$0xff]   ;;  %v1957_v59 = vld [vmem:[%s2521_s1 + $0x128] sm:$0xff]   ;;  %v1959_v1 = vld [vmem:[%s2521_s1 + $0x130] sm:$0xff]  }
  0x14   :  { %1645 = vmatprep.subr.bf16.mxu0 %v1934_v20  ;;  %v39_v58 = vld [vmem:[%s2522_s0 + $0x60] sm:$0xff]  ;;  %v40_v62 = vld [vmem:[%s2522_s0 + $0x68] sm:$0xff]  ;;  %v1960_v2 = vld [vmem:[%s2521_s1 + $0x178] sm:$0xff]  }
  0x15   :  { %1666 = vmatpush3.bf16.msra.mxu1 %v1933_v19  ;;  %v46_v60 = vpack.c.bf16 %v39_v58, %v32_v57  ;;  %v47_v0 = vpack.c.bf16 %v40_v62, %v33_v61  ;;  %v1961_v3 = vld [vmem:[%s2521_s1 + $0x138] sm:$0xff]   ;;  %v31_v4 = vld [vmem:[%s2522_s0 + $0x20] sm:$0xff]  ;;  %v1964_v8 = vld [vmem:[%s2523_s3 + $0x8] sm:$0xff]  }
  0x16   :  { %1667 = vmatprep.subr.bf16.mxu1 %v1936_v22  ;;  %v38_v5 = vld [vmem:[%s2522_s0 + $0x58] sm:$0xff]  ;;  %v1963_v7 = vld [vmem:[%s2523_s3] sm:$0xff]   ;;  %v1965_v9 = vld [vmem:[%s2523_s3 + $0x10] sm:$0xff]  }
  0x17   :  { %1646 = vmatpush3.bf16.msra.mxu0 %v1935_v21  ;;  %v45_v6 = vpack.c.bf16 %v38_v5, %v31_v4  ;;  %v1966_v10 = vld [vmem:[%s2523_s3 + $0x18] sm:$0xff]   ;;  %v1967_v11 = vld [vmem:[%s2523_s3 + $0x20] sm:$0xff]   ;;  %v1968_v12 = vld [vmem:[%s2523_s3 + $0x28] sm:$0xff]  }
  0x18   :  { %1647 = vmatprep.subr.bf16.mxu0 %v1938_v24  ;;  %v1969_v13 = vld [vmem:[%s2523_s3 + $0x30] sm:$0xff]   ;;  %v1970_v14 = vld [vmem:[%s2523_s3 + $0x38] sm:$0xff]   ;;  %v1971_v15 = vld [vmem:[%s2523_s3 + $0x40] sm:$0xff]  }
  0x19   :  { %1668 = vmatpush3.bf16.msra.mxu1 %v1937_v23  ;;  %v1972_v16 = vld [vmem:[%s2523_s3 + $0x48] sm:$0xff]   ;;  %v1973_v17 = vld [vmem:[%s2523_s3 + $0x50] sm:$0xff]   ;;  %v1974_v18 = vld [vmem:[%s2523_s3 + $0x58] sm:$0xff]  }
  0x1a   :  { %1669 = vmatprep.subr.bf16.mxu1 %v1940_v26  ;;  %v1975_v19 = vld [vmem:[%s2523_s3 + $0x60] sm:$0xff]   ;;  %v1976_v20 = vld [vmem:[%s2523_s3 + $0x68] sm:$0xff]   ;;  %v1978_v57 = vld [vmem:[%s2523_s3 + $0x78] sm:$0xff]  }
  0x1b   :  { %1648 = vmatpush3.bf16.msra.mxu0 %v1939_v25  ;;  %v1436_v22 = vld [vmem:[%s2524_s2] ss:$0 sm:$0xff]  ;;  %v1982_v61 = vld [vmem:[%s2523_s3 + $0x98] sm:$0xff]  }
  0x1c   :  { %1649 = vmatprep.subr.bf16.mxu0 %v1942_v28  ;;  %v1979_v58 = vld [vmem:[%s2523_s3 + $0x80] sm:$0xff]  }
  0x1d   :  { %1670 = vmatpush3.bf16.msra.mxu1 %v1941_v27  ;;  %v1983_v62 = vld [vmem:[%s2523_s3 + $0xa0] sm:$0xff]  }
  0x1e   :  { %1671 = vmatprep.subr.bf16.mxu1 %v1944_v30 }
  0x1f   :  { %1650 = vmatpush3.bf16.msra.mxu0 %v1943_v29 }
  0x20   :  { %1679 = vmatprep.subr.bf16.mxu0 %v1946_v38 }
  0x21   :  { %1672 = vmatpush3.bf16.msra.mxu1 %v1945_v34 }
  0x22   :  { %1766 = vmatprep.subr.bf16.mxu1 %v2019_v43  ;;  %484 = vmatmul.mubr.bf16.vlgmr.msra.gmra.mrb[0].mxu0 %v41_v37 }
  0x23   :  { %1680 = vmatpush3.bf16.msra.mxu0 %v1947_v42  ;;  %565 = vmatprep.mubr.bf16.mxu0 %v46_v60  ;;  %v1981_v60 = vld [vmem:[%s2523_s3 + $0x90] sm:$0xff]  }
  0x24   :  { %525 = vmatmul.mubr.bf16.vlgmr.msra.gmra.mrb[0].mxu1 %v43_v46  ;;  %1681 = vmatprep.subr.bf16.mxu0 %v1948_v47 }
  0x25   :  { %1768 = vmatprep.mubr.msk.bf16.mxu1 %vm2020_vm0, %v2019_v43  ;;  %1767 = vmatpush3.bf16.msra.mxu1 %v1962_v56  ;;  %v1977_v56 = vld [vmem:[%s2523_s3 + $0x70] sm:$0xff]  }
  0x26   :  { %1772 = vmatprep.subr.bf16.mxu1 %v2019_v43 }
  0x27   :  { %1682 = vmatpush3.bf16.msra.mxu0 %v1949_v48 }
  0x28   :  { %1683 = vmatprep.subr.bf16.mxu0 %v1950_v49 }
  0x2b   :  { %1684 = vmatpush3.bf16.msra.mxu0 %v1951_v50 }
  0x2c   :  { %1685 = vmatprep.subr.bf16.mxu0 %v1952_v51  ;;  %1769 = vmatmul.mubr.msk.bf16.vlgmr.msra.gmra.mrb[4].mxu1 %vm447_vm1, %v47_v0  ;;  %v1487_v0 = vld [vmem:[%s2525_s4] ss:$0 sm:$0xff] }
  0x2d   :  { %1788 = vmatprep.mubr.msk.bf16.mxu1 %vm2020_vm0, %v2019_v43  ;;  %1773 = vmatpush3.bf16.msra.mxu1 %v1963_v7 }
  0x2e   :  { %1774 = vmatprep.subr.bf16.mxu1 %v2019_v43 }
  0x2f   :  { %1686 = vmatpush3.bf16.msra.mxu0 %v1953_v52 }
  0x30   :  { %1687 = vmatprep.subr.bf16.mxu0 %v1954_v53 }
  0x31   :  { %1775 = vmatpush3.bf16.msra.mxu1 %v1964_v8 }
  0x32   :  { %1776 = vmatprep.subr.bf16.mxu1 %v2019_v43 }
  0x33   :  { %1688 = vmatpush3.bf16.msra.mxu0 %v1955_v54 }
  0x34   :  { %1689 = vmatprep.subr.bf16.mxu0 %v1956_v55 }
  0x35   :  { %1777 = vmatpush3.bf16.msra.mxu1 %v1965_v9 }
  0x36   :  { %1778 = vmatprep.subr.bf16.mxu1 %v2019_v43 }
  0x37   :  { %1690 = vmatpush3.bf16.msra.mxu0 %v1957_v59  ;;  %v1980_v59 = vld [vmem:[%s2523_s3 + $0x88] sm:$0xff]  }
  0x38   :  { %1691 = vmatprep.subr.bf16.mxu0 %v1958_v63  ;;  %v1984_v63 = vld [vmem:[%s2523_s3 + $0xa8] sm:$0xff]  }
  0x39   :  { %1779 = vmatpush3.bf16.msra.mxu1 %v1966_v10  ;;  %v1985_v10 = vld [vmem:[%s2523_s3 + $0xb0] sm:$0xff]  }
  0x3a   :  { %1780 = vmatprep.subr.bf16.mxu1 %v2019_v43 }
  0x3b   :  { %1692 = vmatpush3.bf16.msra.mxu0 %v1959_v1 }
  0x3c   :  { %1693 = vmatprep.subr.bf16.mxu0 %v1960_v2 }
  0x3d   :  { %1781 = vmatpush3.bf16.msra.mxu1 %v1967_v11  ;;  %v1986_v11 = vld [vmem:[%s2523_s3 + $0xb8] sm:$0xff]  }
  0x3e   :  { %1782 = vmatprep.subr.bf16.mxu1 %v2019_v43 }
  0x3f   :  { %1694 = vmatpush3.bf16.msra.mxu0 %v1961_v3 }
  0x40   :  { %1792 = vmatprep.subr.bf16.mxu0 %v2019_v43 }
  0x41   :  { %1783 = vmatpush3.bf16.msra.mxu1 %v1968_v12  ;;  %v1987_v12 = vld [vmem:[%s2523_s3 + $0xc0] sm:$0xff]  }
  0x42   :  { %566 = vmatmul.mubr.bf16.vlgmr.msra.gmra.mrb[4].mxu0 %v45_v6  ;;  %1784 = vmatprep.subr.bf16.mxu1 %v2019_v43 }
  0x43   :  { %1808 = vmatprep.mubr.msk.bf16.mxu0 %vm2020_vm0, %v2019_v43  ;;  %1793 = vmatpush3.bf16.msra.mxu0 %v1971_v15  ;;  %v1990_v15 = vld [vmem:[%s2523_s3 + $0xd8] sm:$0xff]  }
  0x44   :  { %1794 = vmatprep.subr.bf16.mxu0 %v2019_v43 }
  0x45   :  { %1785 = vmatpush3.bf16.msra.mxu1 %v1969_v13  ;;  %v1988_v13 = vld [vmem:[%s2523_s3 + $0xc8] sm:$0xff]  }
  0x46   :  { %1786 = vmatprep.subr.bf16.mxu1 %v2019_v43 }
  0x47   :  { %1795 = vmatpush3.bf16.msra.mxu0 %v1972_v16  ;;  %v1991_v16 = vld [vmem:[%s2523_s3 + $0xe0] sm:$0xff]  }
  0x48   :  { %1796 = vmatprep.subr.bf16.mxu0 %v2019_v43 }
  0x49   :  { %1787 = vmatpush3.bf16.msra.mxu1 %v1970_v14  ;;  %v1989_v14 = vld [vmem:[%s2523_s3 + $0xd0] sm:$0xff]  }
  0x4a   :  { %1812 = vmatprep.subr.bf16.mxu1 %v2019_v43 }
  0x4b   :  { %1797 = vmatpush3.bf16.msra.mxu0 %v1973_v17  ;;  %v1992_v17 = vld [vmem:[%s2523_s3 + $0xe8] sm:$0xff]  }
  0x4c   :  { %1798 = vmatprep.subr.bf16.mxu0 %v2019_v43 }
  0x4f   :  { %1799 = vmatpush3.bf16.msra.mxu0 %v1974_v18  ;;  %v1513_v18 = vld [vmem:[%s2525_s4 + $0x1] ss:$0 sm:$0xff] }
  0x50   :  { %1800 = vmatprep.subr.bf16.mxu0 %v2019_v43 }
  0x53   :  { %1801 = vmatpush3.bf16.msra.mxu0 %v1975_v19 }
  0x54   :  { %1802 = vmatprep.subr.bf16.mxu0 %v2019_v43 }
  0x57   :  { %1803 = vmatpush3.bf16.msra.mxu0 %v1976_v20 }
  0x58   :  { %1804 = vmatprep.subr.bf16.mxu0 %v2019_v43 }
  0x5b   :  { %1805 = vmatpush3.bf16.msra.mxu0 %v1977_v56 }
  0x5c   :  { %1806 = vmatprep.subr.bf16.mxu0 %v2019_v43 }
  0x5f   :  { %1807 = vmatpush3.bf16.msra.mxu0 %v1978_v57 }
  0x60   :  { %1832 = vmatprep.subr.bf16.mxu0 %v2019_v43 }
  0xf5   :  { %v1651_v21 = vpop.f32.mrb[0].mxu0 }
  0xf6   :  { %v1652_v23 = vpop.f32.mrb[1].mxu0 }
  0xf7   :  { %v1653_v24 = vadd.f32 %v1652_v23, %v1651_v21  ;;  %v1654_v25 = vpop.f32.mrb[2].mxu0  ;;  %v1673_v26 = vpop.f32.mrb[0].mxu1 }
  0xf8   :  { %v1655_v27 = vpop.f32.mrb[3].mxu0  ;;  %v1674_v30 = vpop.f32.mrb[1].mxu1 }
  0xf9   :  { %v486_v28 = vadd.f32 %v1653_v24, %v1436_v22  ;;  %v1656_v29 = vadd.f32 %v1655_v27, %v1654_v25  ;;  %v1675_v31 = vadd.f32 %v1674_v30, %v1673_v26  ;;  %v1676_v32 = vpop.f32.mrb[2].mxu1  ;;  %v1995_v30 = vld [vmem:[%s2523_s3 + $0x100] sm:$0xff]  }
  0xfa   :  { %v1677_v34 = vpop.f32.mrb[3].mxu1 }
  0xfb   :  { %v489_v33 = vadd.f32 %v1656_v29, %v1436_v22  ;;  %v527_v35 = vadd.f32 %v1675_v31, %v486_v28  ;;  %v1678_v36 = vadd.f32 %v1677_v34, %v1676_v32  ;;  %v1993_v28 = vld [vmem:[%s2523_s3 + $0xf0] sm:$0xff]   ;;  %v1994_v29 = vld [vmem:[%s2523_s3 + $0xf8] sm:$0xff]   ;;  %v1996_v31 = vld [vmem:[%s2523_s3 + $0x108] sm:$0xff]  }
  0xfc   :  { %v1997_v32 = vld [vmem:[%s2523_s3 + $0x110] sm:$0xff]   ;;  %v1999_v34 = vld [vmem:[%s2523_s3 + $0x120] sm:$0xff]  }
  0xfd   :  { %v530_v37 = vadd.f32 %v1678_v36, %v489_v33  ;;  %v1998_v33 = vld [vmem:[%s2523_s3 + $0x118] sm:$0xff]   ;;  %v1539_v36 = vld [vmem:[%s2525_s4 + $0x2] ss:$0 sm:$0xff] }
  0xff   :  { %v608_v38 = vpop.f32.mrb[4].mxu1 }
 0x100   :  { %v1770_v39 = vpop.f32.mrb[5].mxu1 }
 0x101   :  { %v611_v40 = vpop.f32.mrb[6].mxu1 }
 0x102   :  { %v1771_v41 = vpop.f32.mrb[7].mxu1 }
 0x115   :  { %v1695_v42 = vpop.f32.mrb[4].mxu0 }
 0x116   :  { %v1696_v44 = vpop.f32.mrb[5].mxu0 }
 0x117   :  { %v1697_v45 = vadd.f32 %v1696_v44, %v1695_v42  ;;  %v1698_v46 = vpop.f32.mrb[6].mxu0 }
 0x118   :  { %v1699_v47 = vpop.f32.mrb[7].mxu0 }
 0x119   :  { %v568_v48 = vadd.f32 %v1697_v45, %v527_v35  ;;  %v1700_v49 = vadd.f32 %v1699_v47, %v1698_v46  ;;  %v2000_v35 = vld [vmem:[%s2523_s3 + $0x128] sm:$0xff]   ;;  %v2001_v47 = vld [vmem:[%s2523_s3 + $0x130] sm:$0xff]  }
 0x11b   :  { %v609_v50 = vadd.f32 %v608_v38, %v568_v48  ;;  %v571_v51 = vadd.f32 %v1700_v49, %v530_v37  ;;  %v2002_v48 = vld [vmem:[%s2523_s3 + $0x138] sm:$0xff]   ;;  %v2003_v49 = vld [vmem:[%s2523_s3 + $0x140] sm:$0xff]  }
 0x11d   :  { %v612_v52 = vadd.f32 %v611_v40, %v571_v51  ;;  %v615_v53 = vmax.f32 %v609_v50, 0.0  ;;  %v2004_v50 = vld [vmem:[%s2523_s3 + $0x148] sm:$0xff]   ;;  %v2005_v51 = vld [vmem:[%s2523_s3 + $0x150] sm:$0xff]  }
 0x11f   :  { %v616_v54 = vmax.f32 %v612_v52, 0.0  ;;  %v2006_v52 = vld [vmem:[%s2523_s3 + $0x158] sm:$0xff]  }
 0x121   :  { %v634_v55 = vpack.c.bf16 %v616_v54, %v615_v53  ;;  %v2007_v53 = vld [vmem:[%s2523_s3 + $0x160] sm:$0xff]   ;;  %v2008_v54 = vld [vmem:[%s2523_s3 + $0x168] sm:$0xff]  }
 0x123   :  { %1789 = vmatmul.mubr.bf16.vlgmr.msra.gmra.mrb[8].mxu1 %v634_v55  ;;  %v1565_v55 = vld [vmem:[%s2525_s4 + $0x3] ss:$0 sm:$0xff] }
 0x124   :  { %1828 = vmatprep.mubr.msk.bf16.mxu1 %vm2020_vm0, %v2019_v43  ;;  %1813 = vmatpush3.bf16.msra.mxu1 %v1979_v58 }
 0x125   :  { %1814 = vmatprep.subr.bf16.mxu1 %v2019_v43 }
 0x128   :  { %1815 = vmatpush3.bf16.msra.mxu1 %v1980_v59 }
 0x129   :  { %1816 = vmatprep.subr.bf16.mxu1 %v2019_v43 }
 0x12c   :  { %1817 = vmatpush3.bf16.msra.mxu1 %v1981_v60 }
 0x12d   :  { %1818 = vmatprep.subr.bf16.mxu1 %v2019_v43 }
 0x130   :  { %1819 = vmatpush3.bf16.msra.mxu1 %v1982_v61 }
 0x131   :  { %1820 = vmatprep.subr.bf16.mxu1 %v2019_v43 }
 0x134   :  { %1821 = vmatpush3.bf16.msra.mxu1 %v1983_v62 }
 0x135   :  { %1822 = vmatprep.subr.bf16.mxu1 %v2019_v43 }
 0x138   :  { %1823 = vmatpush3.bf16.msra.mxu1 %v1984_v63 }
 0x139   :  { %1824 = vmatprep.subr.bf16.mxu1 %v2019_v43 }
 0x13c   :  { %1825 = vmatpush3.bf16.msra.mxu1 %v1985_v10 }
 0x13d   :  { %1826 = vmatprep.subr.bf16.mxu1 %v2019_v43 }
 0x140   :  { %1827 = vmatpush3.bf16.msra.mxu1 %v1986_v11 }
 0x141   :  { %1852 = vmatprep.subr.bf16.mxu1 %v2019_v43 }
 0x1f6   :  { %v723_v1 = vpop.f32.mrb[8].mxu1 }
 0x1f7   :  { %v724_v2 = vadd.f32 %v1487_v0, %v723_v1  ;;  %v1790_v3 = vpop.f32.mrb[9].mxu1  ;;  %v2009_v1 = vld [vmem:[%s2523_s3 + $0x170] sm:$0xff]  }
 0x1f8   :  { %v726_v4 = vpop.f32.mrb[10].mxu1  ;;  %v2011_v3 = vld [vmem:[%s2526_s5] sm:$0xff]  }
 0x1f9   :  { %v727_v5 = vadd.f32 %v1487_v0, %v726_v4  ;;  %v1791_v6 = vpop.f32.mrb[11].mxu1  ;;  %v730_v7 = vmax.f32 %v724_v2, 0.0  ;;  %v2010_v2 = vld [vmem:[%s2523_s3 + $0x178] sm:$0xff]   ;;  %v2012_v4 = vld [vmem:[%s2526_s5 + $0x8] sm:$0xff]  }
 0x1fa   :  { %v2014_v6 = vld [vmem:[%s2526_s5 + $0x18] sm:$0xff]  }
 0x1fb   :  { %v731_v8 = vmax.f32 %v727_v5, 0.0  ;;  %v2013_v5 = vld [vmem:[%s2526_s5 + $0x10] sm:$0xff]  }
 0x1fd   :  { %v751_v9 = vpack.c.bf16 %v731_v8, %v730_v7  ;;  %v2015_v7 = vld [vmem:[%s2526_s5 + $0x20] sm:$0xff]   ;;  %v2016_v8 = vld [vmem:[%s2526_s5 + $0x28] sm:$0xff]  }
 0x1ff   :  { %1809 = vmatmul.mubr.bf16.vlgmr.msra.gmra.mrb[8].mxu0 %v751_v9  ;;  %v1591_v9 = vld [vmem:[%s2525_s4 + $0x4] ss:$0 sm:$0xff] }
 0x200   :  { %1848 = vmatprep.mubr.msk.bf16.mxu0 %vm2020_vm0, %v2019_v43  ;;  %1833 = vmatpush3.bf16.msra.mxu0 %v1987_v12 }
 0x201   :  { %1834 = vmatprep.subr.bf16.mxu0 %v2019_v43 }
 0x204   :  { %1835 = vmatpush3.bf16.msra.mxu0 %v1988_v13 }
 0x205   :  { %1836 = vmatprep.subr.bf16.mxu0 %v2019_v43 }
 0x208   :  { %1837 = vmatpush3.bf16.msra.mxu0 %v1989_v14 }
 0x209   :  { %1838 = vmatprep.subr.bf16.mxu0 %v2019_v43 }
 0x20c   :  { %1839 = vmatpush3.bf16.msra.mxu0 %v1990_v15 }
 0x20d   :  { %1840 = vmatprep.subr.bf16.mxu0 %v2019_v43 }
 0x210   :  { %1841 = vmatpush3.bf16.msra.mxu0 %v1991_v16 }
 0x211   :  { %1842 = vmatprep.subr.bf16.mxu0 %v2019_v43 }
 0x214   :  { %1843 = vmatpush3.bf16.msra.mxu0 %v1992_v17 }
 0x215   :  { %1844 = vmatprep.subr.bf16.mxu0 %v2019_v43 }
 0x218   :  { %1845 = vmatpush3.bf16.msra.mxu0 %v1993_v28 }
 0x219   :  { %1846 = vmatprep.subr.bf16.mxu0 %v2019_v43 }
 0x21c   :  { %1847 = vmatpush3.bf16.msra.mxu0 %v1994_v29 }
 0x21d   :  { %1872 = vmatprep.subr.bf16.mxu0 %v2019_v43 }
 0x2d2   :  { %v840_v19 = vpop.f32.mrb[8].mxu0 }
 0x2d3   :  { %v841_v20 = vadd.f32 %v1513_v18, %v840_v19  ;;  %v1810_v21 = vpop.f32.mrb[9].mxu0  ;;  %v2017_v19 = vld [vmem:[%s2526_s5 + $0x30] sm:$0xff]  }
 0x2d4   :  { %v843_v22 = vpop.f32.mrb[10].mxu0  ;;  %v1617_v21 = vld [vmem:[%s2525_s4 + $0x5] ss:$0 sm:$0xff] }
 0x2d5   :  { %v844_v23 = vadd.f32 %v1513_v18, %v843_v22  ;;  %v1811_v24 = vpop.f32.mrb[11].mxu0  ;;  %v847_v25 = vmax.f32 %v841_v20, 0.0  ;;  %v2018_v20 = vld [vmem:[%s2526_s5 + $0x38] sm:$0xff]  }
 0x2d7   :  { %v848_v26 = vmax.f32 %v844_v23, 0.0 }
 0x2d9   :  { %v868_v27 = vpack.c.bf16 %v848_v26, %v847_v25 }
 0x2db   :  { %1829 = vmatmul.mubr.bf16.vlgmr.msra.gmra.mrb[12].mxu1 %v868_v27 }
 0x2dc   :  { %1868 = vmatprep.mubr.msk.bf16.mxu1 %vm2020_vm0, %v2019_v43  ;;  %1853 = vmatpush3.bf16.msra.mxu1 %v1995_v30 }
 0x2dd   :  { %1854 = vmatprep.subr.bf16.mxu1 %v2019_v43 }
 0x2e0   :  { %1855 = vmatpush3.bf16.msra.mxu1 %v1996_v31 }
 0x2e1   :  { %1856 = vmatprep.subr.bf16.mxu1 %v2019_v43 }
 0x2e4   :  { %1857 = vmatpush3.bf16.msra.mxu1 %v1997_v32 }
 0x2e5   :  { %1858 = vmatprep.subr.bf16.mxu1 %v2019_v43 }
 0x2e8   :  { %1859 = vmatpush3.bf16.msra.mxu1 %v1998_v33 }
 0x2e9   :  { %1860 = vmatprep.subr.bf16.mxu1 %v2019_v43 }
 0x2ec   :  { %1861 = vmatpush3.bf16.msra.mxu1 %v1999_v34 }
 0x2ed   :  { %1862 = vmatprep.subr.bf16.mxu1 %v2019_v43 }
 0x2f0   :  { %1863 = vmatpush3.bf16.msra.mxu1 %v2000_v35 }
 0x2f1   :  { %1864 = vmatprep.subr.bf16.mxu1 %v2019_v43 }
 0x2f4   :  { %1865 = vmatpush3.bf16.msra.mxu1 %v2001_v47 }
 0x2f5   :  { %1866 = vmatprep.subr.bf16.mxu1 %v2019_v43 }
 0x2f8   :  { %1867 = vmatpush3.bf16.msra.mxu1 %v2002_v48 }
 0x2f9   :  { %1892 = vmatprep.subr.bf16.mxu1 %v2019_v43 }
 0x3ae   :  { %v957_v37 = vpop.f32.mrb[12].mxu1 }
 0x3af   :  { %v958_v38 = vadd.f32 %v1539_v36, %v957_v37  ;;  %v1830_v39 = vpop.f32.mrb[13].mxu1 }
 0x3b0   :  { %v960_v40 = vpop.f32.mrb[14].mxu1 }
 0x3b1   :  { %v961_v41 = vadd.f32 %v1539_v36, %v960_v40  ;;  %v1831_v42 = vpop.f32.mrb[15].mxu1  ;;  %v964_v44 = vmax.f32 %v958_v38, 0.0 }
 0x3b3   :  { %v965_v45 = vmax.f32 %v961_v41, 0.0 }
 0x3b5   :  { %v985_v46 = vpack.c.bf16 %v965_v45, %v964_v44 }
 0x3b7   :  { %1849 = vmatmul.mubr.bf16.vlgmr.msra.gmra.mrb[12].mxu0 %v985_v46 }
 0x3b8   :  { %1888 = vmatprep.mubr.msk.bf16.mxu0 %vm2020_vm0, %v2019_v43  ;;  %1873 = vmatpush3.bf16.msra.mxu0 %v2003_v49 }
 0x3b9   :  { %1874 = vmatprep.subr.bf16.mxu0 %v2019_v43 }
 0x3bc   :  { %1875 = vmatpush3.bf16.msra.mxu0 %v2004_v50 }
 0x3bd   :  { %1876 = vmatprep.subr.bf16.mxu0 %v2019_v43 }
 0x3c0   :  { %1877 = vmatpush3.bf16.msra.mxu0 %v2005_v51 }
 0x3c1   :  { %1878 = vmatprep.subr.bf16.mxu0 %v2019_v43 }
 0x3c4   :  { %1879 = vmatpush3.bf16.msra.mxu0 %v2006_v52 }
 0x3c5   :  { %1880 = vmatprep.subr.bf16.mxu0 %v2019_v43 }
 0x3c8   :  { %1881 = vmatpush3.bf16.msra.mxu0 %v2007_v53 }
 0x3c9   :  { %1882 = vmatprep.subr.bf16.mxu0 %v2019_v43 }
 0x3cc   :  { %1883 = vmatpush3.bf16.msra.mxu0 %v2008_v54 }
 0x3cd   :  { %1884 = vmatprep.subr.bf16.mxu0 %v2019_v43 }
 0x3d0   :  { %1885 = vmatpush3.bf16.msra.mxu0 %v2009_v1 }
 0x3d1   :  { %1886 = vmatprep.subr.bf16.mxu0 %v2019_v43 }
 0x3d4   :  { %1887 = vmatpush3.bf16.msra.mxu0 %v2010_v2 }
 0x48a   :  { %v1074_v56 = vpop.f32.mrb[12].mxu0 }
 0x48b   :  { %v1075_v57 = vadd.f32 %v1565_v55, %v1074_v56  ;;  %v1850_v58 = vpop.f32.mrb[13].mxu0 }
 0x48c   :  { %v1077_v59 = vpop.f32.mrb[14].mxu0 }
 0x48d   :  { %v1078_v60 = vadd.f32 %v1565_v55, %v1077_v59  ;;  %v1851_v61 = vpop.f32.mrb[15].mxu0  ;;  %v1081_v62 = vmax.f32 %v1075_v57, 0.0 }
 0x48f   :  { %v1082_v63 = vmax.f32 %v1078_v60, 0.0 }
 0x491   :  { %v1102_v0 = vpack.c.bf16 %v1082_v63, %v1081_v62 }
 0x493   :  { %1869 = vmatmul.mubr.bf16.vlgmr.msra.gmra.mrb[16].mxu1 %v1102_v0 }
 0x494   :  { %1908 = vmatprep.mubr.msk.bf16.mxu1 %vm2020_vm0, %v2019_v43  ;;  %1893 = vmatpush3.bf16.msra.mxu1 %v2011_v3 }
 0x495   :  { %1894 = vmatprep.subr.bf16.mxu1 %v2019_v43 }
 0x498   :  { %1895 = vmatpush3.bf16.msra.mxu1 %v2012_v4 }
 0x499   :  { %1896 = vmatprep.subr.bf16.mxu1 %v2019_v43 }
 0x49c   :  { %1897 = vmatpush3.bf16.msra.mxu1 %v2013_v5 }
 0x49d   :  { %1898 = vmatprep.subr.bf16.mxu1 %v2019_v43 }
 0x4a0   :  { %1899 = vmatpush3.bf16.msra.mxu1 %v2014_v6 }
 0x4a1   :  { %1900 = vmatprep.subr.bf16.mxu1 %v2019_v43 }
 0x4a4   :  { %1901 = vmatpush3.bf16.msra.mxu1 %v2015_v7 }
 0x4a5   :  { %1902 = vmatprep.subr.bf16.mxu1 %v2019_v43 }
 0x4a8   :  { %1903 = vmatpush3.bf16.msra.mxu1 %v2016_v8 }
 0x4a9   :  { %1904 = vmatprep.subr.bf16.mxu1 %v2019_v43 }
 0x4ac   :  { %1905 = vmatpush3.bf16.msra.mxu1 %v2017_v19 }
 0x4ad   :  { %1906 = vmatprep.subr.bf16.mxu1 %v2019_v43  ;;  %v1626_v43 = vld [vmem:[%s2527_s6] ss:$0 sm:$0xff] }
 0x4b0   :  { %1907 = vmatpush3.bf16.msra.mxu1 %v2018_v20 }
 0x566   :  { %v1191_v10 = vpop.f32.mrb[16].mxu1 }
 0x567   :  { %v1192_v11 = vadd.f32 %v1591_v9, %v1191_v10  ;;  %v1870_v12 = vpop.f32.mrb[17].mxu1 }
 0x568   :  { %v1194_v13 = vpop.f32.mrb[18].mxu1 }
 0x569   :  { %v1195_v14 = vadd.f32 %v1591_v9, %v1194_v13  ;;  %v1871_v15 = vpop.f32.mrb[19].mxu1  ;;  %v1198_v16 = vmax.f32 %v1192_v11, 0.0 }
 0x56b   :  { %v1199_v17 = vmax.f32 %v1195_v14, 0.0 }
 0x56d   :  { %v1219_v18 = vpack.c.bf16 %v1199_v17, %v1198_v16 }
 0x56f   :  { %1889 = vmatmul.mubr.bf16.vlgmr.msra.gmra.mrb[16].mxu0 %v1219_v18 }
 0x642   :  { %v1308_v22 = vpop.f32.mrb[16].mxu0 }
 0x643   :  { %v1309_v23 = vadd.f32 %v1617_v21, %v1308_v22  ;;  %v1890_v24 = vpop.f32.mrb[17].mxu0 }
 0x644   :  { %v1311_v25 = vpop.f32.mrb[18].mxu0 }
 0x645   :  { %v1312_v26 = vadd.f32 %v1617_v21, %v1311_v25  ;;  %v1891_v27 = vpop.f32.mrb[19].mxu0  ;;  %v1315_v28 = vmax.f32 %v1309_v23, 0.0 }
 0x647   :  { %v1316_v29 = vmax.f32 %v1312_v26, 0.0 }
 0x649   :  { %v1334_v30 = vpack.c.bf16 %v1316_v29, %v1315_v28 }
 0x64b   :  { %1909 = vmatmul.mubr.bf16.vlgmr.msra.gmra.mrb[20].mxu1 %v1334_v30 }
 0x71e   :  { %v1423_v31 = vpop.f32.mrb[20].mxu1 }
 0x71f   :  { %v1424_v32 = vadd.f32 %v1626_v43, %v1423_v31  ;;  %v1910_v33 = vpop.f32.mrb[21].mxu1 }
 0x720   :  { %v1426_v34 = vpop.f32.mrb[22].mxu1 }
 0x721   :  { %1430 = vst [vmem:[%s2528_s7] sm:$0xff] %v1424_v32  ;;  %v1427_v35 = vadd.f32 %v1626_v43, %v1426_v34  ;;  %v1911_v36 = vpop.f32.mrb[23].mxu1 }
 0x723   :  { %1431 = vst [vmem:[%s2528_s7 + $0x8] sm:$0xff] %v1427_v35 }

</bundles_post_ra>
